<compile_context>
chip_gen: v5e
topology: v5e:2x2
jax: 0.10.0
libtpu: 0.0.40
codegen_flags: <defaults>
</compile_context>

<pallas_src>
import functools

import jax
import jax.numpy as jnp
from jax.experimental import pallas as pl
from jax.experimental.pallas import tpu as pltpu

EPS = 1e-6


def _round_up(x, m):
    return (x + m - 1) // m * m


def _layernorm_kernel(x_ref, g_ref, b_ref, o_ref, *, d_true, d_pad, eps):
    """One row-block of LayerNorm (matches the PyTorch module exactly)."""
    x = x_ref[...].astype(jnp.float32)                       # (TR, D_pad)

    if d_pad != d_true:
        # Padded lanes must not contribute to the per-row statistics.
        lane = jax.lax.broadcasted_iota(jnp.int32, x.shape, dimension=1)
        valid = lane < d_true
        x = jnp.where(valid, x, 0.0)

    mean = jnp.sum(x, axis=-1, keepdims=True) * (1.0 / d_true)
    diff = x - mean
    if d_pad != d_true:
        diff = jnp.where(valid, diff, 0.0)

    # Unbiased variance (divisor D-1), eps added to std — as in torch x.std().
    var = jnp.sum(diff * diff, axis=-1, keepdims=True) * (1.0 / (d_true - 1))
    inv = pl.reciprocal(jnp.sqrt(var) + eps, approx=True)     # EUP, not VALU divide

    y = g_ref[...] * (diff * inv) + b_ref[...]
    o_ref[...] = y.astype(o_ref.dtype)


def layernorm_forward(x, gamma, beta, *, eps=EPS, block_rows=256):
    """LayerNorm over the last dim of x (any leading shape)."""
    orig_shape = x.shape
    d = orig_shape[-1]
    n = 1
    for s in orig_shape[:-1]:
        n *= s

    # Lane-dense + sublane-aligned tiling.
    d_pad = max(_round_up(d, 128), 128)          # last block dim multiple of 128
    tr = min(block_rows, _round_up(n, 8))        # rows per grid step, multiple of 8
    n_pad = _round_up(n, tr)

    x2 = jnp.pad(x.reshape(n, d), ((0, n_pad - n), (0, d_pad - d)))
    g2 = jnp.pad(gamma.reshape(1, d), ((0, 0), (0, d_pad - d)))
    b2 = jnp.pad(beta.reshape(1, d), ((0, 0), (0, d_pad - d)))

    kernel = functools.partial(_layernorm_kernel, d_true=d, d_pad=d_pad, eps=eps)

    out = pl.pallas_call(
        kernel,
        out_shape=jax.ShapeDtypeStruct((n_pad, d_pad), x.dtype),
        grid=(n_pad // tr,),
        in_specs=[
            pl.BlockSpec((tr, d_pad), lambda i: (i, 0)),   # x row-tile
            pl.BlockSpec((1, d_pad), lambda i: (0, 0)),    # gamma (resident)
            pl.BlockSpec((1, d_pad), lambda i: (0, 0)),    # beta  (resident)
        ],
        out_specs=pl.BlockSpec((tr, d_pad), lambda i: (i, 0)),
        compiler_params=pltpu.CompilerParams(
            dimension_semantics=("parallel",)),
    )(x2, g2, b2)

    return out[:n, :d].reshape(orig_shape)


def layernorm_reference(x, gamma, beta, eps=EPS):
    """Pure-JAX reference with identical semantics (torch unbiased std)."""
    mean = x.mean(-1, keepdims=True)
    diff = x - mean
    var = jnp.sum(diff * diff, axis=-1, keepdims=True) / (x.shape[-1] - 1)
    std = jnp.sqrt(var)
    return gamma * diff / (std + eps) + beta


if __name__ == "__main__":
    B, T, D = 2, 8, 32

    key = jax.random.PRNGKey(0)
    kx, kg, kb = jax.random.split(key, 3)

    x = jax.random.normal(kx, (B, T, D), dtype=jnp.float32)
    # Module init is gamma=ones / beta=zeros; perturb so the affine part is
    # actually exercised by the test.
    gamma = (1.0 + 0.1 * jax.random.normal(kg, (D,))).astype(jnp.float32)
    beta = (0.1 * jax.random.normal(kb, (D,))).astype(jnp.float32)

    out = layernorm_forward(x, gamma, beta)
    out = jax.block_until_ready(out)

    ref = layernorm_reference(x, gamma, beta)
    assert out.shape == (B, T, D)
    assert bool(jnp.all(jnp.isfinite(out)))
    err = float(jnp.max(jnp.abs(out - ref)))
    assert bool(jnp.allclose(out, ref, atol=1e-2, rtol=1e-2)), f"max abs err {err}"

    print("KERNEL_OK")
</pallas_src>

<mosaic_0001>
module attributes {stable_mosaic.version = 11 : i64} {
  func.func @_layernorm_kernel(%arg0: i32, %arg1: memref<16x128xf32, #tpu.memory_space<vmem>>, %arg2: memref<1x128xf32, #tpu.memory_space<vmem>>, %arg3: memref<1x128xf32, #tpu.memory_space<vmem>>, %arg4: memref<16x128xf32, #tpu.memory_space<vmem>>) attributes {dimension_semantics = [#tpu.dimension_semantics<parallel>], iteration_bounds = array<i64: 1>, scalar_prefetch = 0 : i64, scratch_operands = 0 : i64, tpu.core_type = #tpu.core_type<tc>, window_params = [{transform_indices = @transform_0, window_bounds = array<i64: 16, 128>}, {pipeline_mode = #tpu.pipeline_mode<synchronous>, transform_indices = @transform_1, window_bounds = array<i64: 1, 128>}, {pipeline_mode = #tpu.pipeline_mode<synchronous>, transform_indices = @transform_2, window_bounds = array<i64: 1, 128>}, {transform_indices = @transform_3, window_bounds = array<i64: 16, 128>}]} {
    %c0 = arith.constant 0 : index
    %c0_0 = arith.constant 0 : index
    %0 = vector.load %arg1[%c0, %c0_0] : memref<16x128xf32, #tpu.memory_space<vmem>>, vector<16x128xf32>
    %1 = tpu.iota {dimensions = array<i32: 1>} : vector<16x128xi32>
    %c32_i32 = arith.constant 32 : i32
    %2 = vector.broadcast %c32_i32 : i32 to vector<16x128xi32>
    %3 = arith.cmpi slt, %1, %2 : vector<16x128xi32>
    %cst = arith.constant 0.000000e+00 : f32
    %4 = vector.broadcast %cst : f32 to vector<16x128xf32>
    %5 = arith.select %3, %0, %4 : vector<16x128xi1>, vector<16x128xf32>
    %cst_1 = arith.constant dense<0.000000e+00> : vector<16xf32>
    %6 = vector.multi_reduction <add>, %5, %cst_1 [1] : vector<16x128xf32> to vector<16xf32>
    %7 = vector.shape_cast %6 : vector<16xf32> to vector<16x1xf32>
    %cst_2 = arith.constant 3.125000e-02 : f32
    %8 = vector.broadcast %cst_2 : f32 to vector<16x1xf32>
    %9 = arith.mulf %7, %8 : vector<16x1xf32>
    %10 = vector.broadcast %9 : vector<16x1xf32> to vector<16x128xf32>
    %11 = arith.subf %5, %10 : vector<16x128xf32>
    %cst_3 = arith.constant 0.000000e+00 : f32
    %12 = vector.broadcast %cst_3 : f32 to vector<16x128xf32>
    %13 = arith.select %3, %11, %12 : vector<16x128xi1>, vector<16x128xf32>
    %14 = arith.mulf %13, %13 : vector<16x128xf32>
    %cst_4 = arith.constant dense<0.000000e+00> : vector<16xf32>
    %15 = vector.multi_reduction <add>, %14, %cst_4 [1] : vector<16x128xf32> to vector<16xf32>
    %16 = vector.shape_cast %15 : vector<16xf32> to vector<16x1xf32>
    %cst_5 = arith.constant 0.0322580636 : f32
    %17 = vector.broadcast %cst_5 : f32 to vector<16x1xf32>
    %18 = arith.mulf %16, %17 : vector<16x1xf32>
    %19 = math.sqrt %18 : vector<16x1xf32>
    %cst_6 = arith.constant 9.99999997E-7 : f32
    %20 = vector.broadcast %cst_6 : f32 to vector<16x1xf32>
    %21 = arith.addf %19, %20 : vector<16x1xf32>
    %22 = tpu.reciprocal %21 {approx = true} : vector<16x1xf32> -> vector<16x1xf32>
    %c0_7 = arith.constant 0 : index
    %c0_8 = arith.constant 0 : index
    %23 = vector.load %arg2[%c0_7, %c0_8] : memref<1x128xf32, #tpu.memory_space<vmem>>, vector<1x128xf32>
    %24 = vector.broadcast %22 : vector<16x1xf32> to vector<16x128xf32>
    %25 = arith.mulf %13, %24 : vector<16x128xf32>
    %26 = vector.broadcast %23 : vector<1x128xf32> to vector<16x128xf32>
    %27 = arith.mulf %26, %25 : vector<16x128xf32>
    %c0_9 = arith.constant 0 : index
    %c0_10 = arith.constant 0 : index
    %28 = vector.load %arg3[%c0_9, %c0_10] : memref<1x128xf32, #tpu.memory_space<vmem>>, vector<1x128xf32>
    %29 = vector.broadcast %28 : vector<1x128xf32> to vector<16x128xf32>
    %30 = arith.addf %27, %29 : vector<16x128xf32>
    %c0_11 = arith.constant 0 : index
    %c0_12 = arith.constant 0 : index
    %31 = vector.load %arg4[%c0_11, %c0_12] : memref<16x128xf32, #tpu.memory_space<vmem>>, vector<16x128xf32>
    tpu.vector_store %arg4[%c0_11, %c0_12], %30 {strides = array<i32>} : memref<16x128xf32, #tpu.memory_space<vmem>>, vector<16x128xf32>,
    return
  }
  func.func @transform_0(%arg0: i32) -> (i32, i32) {
    %c0_i32 = arith.constant 0 : i32
    %c0_i32_0 = arith.constant 0 : i32
    return %arg0, %c0_i32 : i32, i32
  }
  func.func @transform_1(%arg0: i32) -> (i32, i32) {
    %c0_i32 = arith.constant 0 : i32
    %c0_i32_0 = arith.constant 0 : i32
    %c0_i32_1 = arith.constant 0 : i32
    return %c0_i32, %c0_i32_0 : i32, i32
  }
  func.func @transform_2(%arg0: i32) -> (i32, i32) {
    %c0_i32 = arith.constant 0 : i32
    %c0_i32_0 = arith.constant 0 : i32
    %c0_i32_1 = arith.constant 0 : i32
    return %c0_i32, %c0_i32_0 : i32, i32
  }
  func.func @transform_3(%arg0: i32) -> (i32, i32) {
    %c0_i32 = arith.constant 0 : i32
    %c0_i32_0 = arith.constant 0 : i32
    return %arg0, %c0_i32 : i32, i32
  }
}

</mosaic_0001>

<bundles_post_ra>
// kernel: tpu_custom_call.1
= control target key start
LH: loop header
LB: loop body
LE: loop exit
PB: predicated region body
PF: predicated region fallthrough
CT: control target
= control target key end

     0   :  { %8 = vsyncpa [#allocation3], 0  ;;  %s274_s0 = inlined_call_operand.hbm [shape: f32[16,128], index: 0, kind: input, shape index: {}]   ;;  %s275_s1 = inlined_call_operand.hbm [shape: f32[1,128], index: 1, kind: input, shape index: {}]   ;;  %s276_s2 = inlined_call_operand.vmem [shape: f32[1,128], index: 2, kind: input, shape index: {}]   ;;  %s277_s3 = inlined_call_operand.hbm [shape: f32[16,128], index: 3, kind: output, shape index: {}]  }
   0x1   :  { %9 = vsyncpa [#allocation6], 0 }
   0x2   :  { %10 = vsyncpa [#allocation4], 0  ;;  %s15_s14 = sshll.u32 %s274_s0, 4  ;;  %s227_s15 = smov [#allocation2]   ;;  %s16_s14 = int_to_ptr.hbm [resolvable:$true] %s15_s14 }
   0x3   :  { %s17_s16 = sshll.u32 %s227_s15, 4  ;;  %s29_s19 = sshll.u32 %s275_s1, 4  ;;  %s18_s16 = int_to_ptr.vmem [resolvable:$true] %s17_s16  ;;  %s30_s19 = int_to_ptr.hbm [resolvable:$true] %s29_s19 }
   0x4   :  { %s228_s20 = smov 128   ;;  %s229_s21 = smov 8  }
   0x5   :  { %23 = dma.hbm_to_vmem [thread:$0]  %s16_s14, 256, %s18_s16, [#allocation3], %s228_s20, %s228_s20, %s229_s21  }
   0x6   :  { %s230_s22 = smov [#allocation5]  }
   0x7   :  { %s31_s23 = sshll.u32 %s230_s22, 4  ;;  %s32_s23 = int_to_ptr.vmem [resolvable:$true] %s31_s23 }
   0x8   :  { %34 = dma.hbm_to_vmem [thread:$0]  %s30_s19, 16, %s32_s23, [#allocation6]  }
   0x9   :  { %221 = dma.done.wait [#allocation3], 256  }
   0xa   :  { %222 = vsyncadd [#allocation3], 4294967040 }
   0xb   :  { %223 = dma.done.wait [#allocation6], 16  }
   0xc   :  { %224 = vsyncadd [#allocation6], 4294967280  ;;  %v47_v0 = vlaneseq  ;;  %v45_v2 = vld [vmem:[#allocation2] sm:$0xff]  ;;  %v46_v4 = vld [vmem:[#allocation2 + $0x8] sm:$0xff]  ;;  %s231_s24 = smov [#allocation7]   ;;  %s120_s28 = sshll.u32 %s277_s3, 4  ;;  %s121_s28 = int_to_ptr.hbm [resolvable:$true] %s120_s28 }
   0xd   :  { %v139_v41 = vld [vmem:[#allocation5] ss:$0 sm:$0xff]  ;;  %v140_v45 = vld [vmem:[%s276_s2] ss:$0 sm:$0xff]  ;;  %s118_s25 = sshll.u32 %s231_s24, 4  ;;  %s119_s25 = int_to_ptr.vmem [resolvable:$true] %s118_s25 }
   0xe   :  { %v48_v1 = vand.u32 127, %v47_v0 }
  0x10   :  { %vm49_vm0 = vcmp.lt.s32.totalorder %v48_v1, 32 }
  0x11   :  { %v50_v3 = vsel %vm49_vm0, %v45_v2, 0.0  ;;  %v51_v5 = vsel %vm49_vm0, %v46_v4, 0.0 }
  0x12   :  { %52 = vadd.xlane.f32.xlu0 %v50_v3 }
  0x1a   :  { %54 = vadd.xlane.f32.xlu0 %v51_v5 }
  0x85   :  { %v53_v6 = vpop.xlane.xlu0 %52 }
  0x86   :  { %v56_v7 = vmul.f32 0.03125, %v53_v6 }
  0x88   :  { %v58_v8 = vsub.f32 %v50_v3, %v56_v7 }
  0x8a   :  { %v60_v9 = vsel %vm49_vm0, %v58_v8, 0.0 }
  0x8b   :  { %v62_v10 = vmul.f32 %v60_v9, %v60_v9 }
  0x8d   :  { %64 = vadd.xlane.f32.xlu1 %v62_v10  ;;  %v55_v11 = vpop.xlane.xlu0 %54 }
  0x8e   :  { %v57_v12 = vmul.f32 0.03125, %v55_v11 }
  0x90   :  { %v59_v13 = vsub.f32 %v51_v5, %v57_v12 }
  0x92   :  { %v61_v14 = vsel %vm49_vm0, %v59_v13, 0.0 }
  0x93   :  { %v63_v15 = vmul.f32 %v61_v14, %v61_v14 }
  0x95   :  { %66 = vadd.xlane.f32.xlu1 %v63_v15 }
 0x100   :  { %v65_v16 = vpop.xlane.xlu1 %64 }
 0x101   :  { %v68_v17 = vmul.f32 0.032258064, %v65_v16 }
 0x103   :  { %141 = vrsqrt.f32 %v68_v17  ;;  %vm77_vm1 = vcmp.eq.f32.partialorder %v68_v17, inf  ;;  %v80_v30 = vand.u32 2147483648, %v68_v17  ;;  %vm79_vm2 = vcmp.eq.f32.partialorder %v68_v17, 0.0 }
 0x108   :  { %v67_v18 = vpop.xlane.xlu1 %66 }
 0x109   :  { %v142_v19 = vpop.eup %141  ;;  %v69_v20 = vmul.f32 0.032258064, %v67_v18 }
 0x10a   :  { %v71_v21 = vmul.f32 %v142_v19, %v68_v17 }
 0x10b   :  { %143 = vrsqrt.f32 %v69_v20  ;;  %vm89_vm3 = vcmp.eq.f32.partialorder %v69_v20, inf  ;;  %v92_v38 = vand.u32 2147483648, %v69_v20  ;;  %vm91_vm4 = vcmp.eq.f32.partialorder %v69_v20, 0.0 }
 0x10c   :  { %v72_v22 = vmul.f32 %v142_v19, %v71_v21 }
 0x10e   :  { %v73_v23 = vmul.f32 0.5, %v72_v22 }
 0x110   :  { %v74_v24 = vsub.f32 1.5, %v73_v23 }
 0x111   :  { %v144_v25 = vpop.eup %143 }
 0x112   :  { %v75_v26 = vmul.f32 %v142_v19, %v74_v24  ;;  %v83_v27 = vmul.f32 %v144_v25, %v69_v20 }
 0x114   :  { %v76_v28 = vmul.f32 %v75_v26, %v68_v17  ;;  %v84_v29 = vmul.f32 %v144_v25, %v83_v27 }
 0x116   :  { %v85_v31 = vmul.f32 0.5, %v84_v29  ;;  %v78_v32 = vsel %vm77_vm1, %v68_v17, %v76_v28 }
 0x117   :  { %v81_v33 = vsel %vm79_vm2, %v80_v30, %v78_v32 }
 0x118   :  { %v86_v34 = vsub.f32 1.5, %v85_v31  ;;  %v94_v35 = vadd.f32 1e-06, %v81_v33 }
 0x11a   :  { %v87_v36 = vmul.f32 %v144_v25, %v86_v34  ;;  %145 = vrcp.f32 %v94_v35 }
 0x11c   :  { %v88_v37 = vmul.f32 %v87_v36, %v69_v20 }
 0x11e   :  { %v90_v39 = vsel %vm89_vm3, %v69_v20, %v88_v37 }
 0x11f   :  { %v93_v40 = vsel %vm91_vm4, %v92_v38, %v90_v39 }
 0x120   :  { %v146_v42 = vpop.eup %145  ;;  %v95_v43 = vadd.f32 1e-06, %v93_v40 }
 0x121   :  { %v99_v44 = vmul.f32 %v146_v42, %v60_v9 }
 0x122   :  { %147 = vrcp.f32 %v95_v43 }
 0x123   :  { %v104_v46 = vmul.f32 %v139_v41, %v99_v44 }
 0x125   :  { %v110_v47 = vadd.f32 %v140_v45, %v104_v46 }
 0x127   :  { %112 = vst [vmem:[#allocation7] sm:$0xff] %v110_v47 }
 0x128   :  { %v148_v48 = vpop.eup %147 }
 0x129   :  { %v100_v49 = vmul.f32 %v148_v48, %v61_v14 }
 0x12b   :  { %v105_v50 = vmul.f32 %v139_v41, %v100_v49 }
 0x12d   :  { %v111_v51 = vadd.f32 %v140_v45, %v105_v50 }
 0x12f   :  { %113 = vst [vmem:[#allocation7 + $0x8] sm:$0xff] %v111_v51 }
 0x130   :  { %126 = dma.vmem_to_hbm [thread:$0]  %s119_s25, 256, %s121_s28, [#allocation4], %s228_s20, %s228_s20, %s229_s21  }
 0x131   :  { %225 = dma.done.wait [#allocation4], 256  }
 0x132   :  { %226 = vsyncadd [#allocation4], 4294967040 }
 0x133   :  { %131 = vsyncpa [#allocation3], 1 }
 0x134   :  { %132 = vsyncpa [#allocation6], 1 }
 0x135   :  { %133 = vsyncpa [#allocation4], 1 }

</bundles_post_ra>
